<compile_context>
chip_gen: v6e
topology: v6e:2x2x1
jax: 0.10.0
libtpu: 0.0.40
codegen_flags: <defaults>
</compile_context>

<pallas_src>
import functools

import jax
import jax.numpy as jnp
from jax.experimental import pallas as pl
from jax.experimental.pallas import tpu as pltpu

_SMALL_C_MAX = 32  # below this channel count, skip the MXU (VPU broadcast-FMAs)


def _round_up(x, m):
    return ((x + m - 1) // m) * m


def _sublane(dtype):
    return max(8, 32 // jnp.dtype(dtype).itemsize)


def _vmem_capacity_bytes():
    try:
        return int(pltpu.get_tpu_info().vmem_capacity_bytes)
    except Exception:
        return 64 * 1024 * 1024  # v7x-safe fallback


def _residual_kernel(x_ref, w_ref, b_ref, o_ref, *, use_mxu, compute_dtype,
                     gelu_approx):
    """Fused Residual(1x1 channel mix + GELU):  o = gelu(wT @ x + b) + x.

    x_ref : (1, C, tl)  input tile, tokens on the 128-lane axis
    w_ref : (C, C)      transposed weight (bf16 for the MXU path, f32 for VPU)
    b_ref : (C, 1)      bias in the epilogue compute dtype, VMEM-resident
    o_ref : (1, C, tl)  output tile (lane-dense, unmasked stores)
    """
    x = x_ref[0]                                                  # (C, tl)
    if use_mxu:
        h = jnp.dot(w_ref[...], x.astype(w_ref.dtype),
                    preferred_element_type=jnp.float32)           # (C, tl) f32
    else:
        # Small-C fast path: C broadcast-FMAs on the VPU, all in f32.  At
        # C << 128 the MXU would be <2% utilized; this drops the bf16 cast
        # and the MXU result pop entirely.
        w = w_ref[...]                                            # (C, C) f32
        xf = x.astype(jnp.float32)
        h = w[:, 0:1] * xf[0:1, :]
        for c in range(1, w.shape[1]):
            h = h + w[:, c:c + 1] * xf[c:c + 1, :]
    h = h.astype(compute_dtype) + b_ref[...]                      # (C,1) bcast
    # NOTE: PyTorch nn.GELU defaults to the exact erf form; the tanh form keeps
    # the transcendental on the EUP (free slot).  Pass exact_gelu=True to the
    # wrapper for bit-for-bit parity with torch.
    h = jax.nn.gelu(h, approximate=gelu_approx)
    o_ref[0] = (h + x.astype(compute_dtype)).astype(o_ref.dtype)


def residual_forward(x_nchw, w, b, *, out_dtype=None, exact_gelu=False,
                     vmem_fraction=0.70):
    """Residual(fn)(x) = fn(x) + x with fn = 1x1 channel mix + GELU (fused).

    x_nchw: (N, C, H, W)    w: (C_in, C_out) = (C, C)    b: (C,)
    out_dtype: optional output dtype (e.g. bf16 to halve writeback traffic).
    """
    N, C, H, W = x_nchw.shape
    HW = H * W
    in_dtype = jnp.dtype(x_nchw.dtype)
    out_dtype = jnp.dtype(out_dtype) if out_dtype is not None else in_dtype
    in_itemsize = in_dtype.itemsize
    out_itemsize = out_dtype.itemsize

    use_mxu = C >= _SMALL_C_MAX
    # bf16 epilogue (bias+GELU+residual) halves VALU pressure when the output
    # is bf16; otherwise stay f32 (also the right choice on v5e: no bf16 VALU).
    compute_dtype = (jnp.dtype(jnp.bfloat16)
                     if out_dtype == jnp.dtype(jnp.bfloat16)
                     else jnp.dtype(jnp.float32))
    w_dtype = jnp.dtype(jnp.bfloat16) if use_mxu else jnp.dtype(jnp.float32)

    # ---- generation-aware VMEM budget (v5e/v6e: 128 MiB, v7x: 64 MiB per TC).
    vmem_capacity = _vmem_capacity_bytes()
    vmem_budget = int(vmem_capacity * vmem_fraction)

    # Resident parameters (counted double-buffered as a safety margin in case
    # single-buffering is unavailable on this jax version).
    c_w = _round_up(C, _sublane(w_dtype))
    c_b = _round_up(C, _sublane(compute_dtype))
    const_bytes = 2 * (c_w * C * w_dtype.itemsize + c_b * compute_dtype.itemsize)

    # Per-tile VMEM estimate: sublane-padded C, double-buffered in/out tiles,
    # plus the in-kernel f32/bf16 temporaries the body materializes.
    c_in = _round_up(C, _sublane(in_dtype))
    c_out = _round_up(C, _sublane(out_dtype))
    c_f32 = _round_up(C, 8)
    c_bf16 = _round_up(C, 16)

    def _tile_bytes(t):
        bytes_ = 2 * c_in * t * in_itemsize        # x tile (double-buffered)
        bytes_ += 2 * c_out * t * out_itemsize     # out tile (double-buffered)
        bytes_ += 3 * c_f32 * t * 4                # f32 temporaries in the body
        if use_mxu:
            bytes_ += c_bf16 * t * 2               # bf16 cast of x for the MXU
        if compute_dtype == jnp.dtype(jnp.bfloat16):
            bytes_ += 2 * c_bf16 * t * 2           # bf16 epilogue temporaries
        return bytes_

    tile_budget = max(vmem_budget - const_bytes, 4 * 1024 * 1024)

    # ---- token (lane) axis: pad only to 128; pick the largest tile that is a
    #      multiple-of-128 divisor of the padded token count and fits in the
    #      VMEM budget, so there is no per-tile padding and no extra pad/slice
    #      HBM pass.
    HW_pad = _round_up(HW, 128)
    nb = HW_pad // 128
    fitting = [d for d in range(nb, 0, -1)
               if nb % d == 0 and _tile_bytes(128 * d) <= tile_budget] or [1]
    d = fitting[0]
    if N * (nb // d) < 2 and nb > 1:
        # v7x has 2 TensorCores: ensure a "parallel" grid axis has >= 2 steps,
        # unless splitting would drop tiles below the ~512-lane
        # overhead-amortization point.
        split = [dd for dd in fitting if nb // dd >= 2]
        if split and (128 * split[0] >= 512 or 128 * d < 512):
            d = split[0]
    tl = 128 * d

    x3 = x_nchw.reshape(N, C, HW)
    if HW_pad != HW:
        x3 = jnp.pad(x3, ((0, 0), (0, 0), (0, HW_pad - HW)))

    # ---- parameter prep hoisted out of the kernel (done once, not per tile).
    wt = jnp.asarray(w, jnp.float32).T.astype(w_dtype)        # (C_out, C_in)
    b2 = jnp.asarray(b, jnp.float32).reshape(C, 1).astype(compute_dtype)

    grid = (N, HW_pad // tl)

    kernel_fn = functools.partial(
        _residual_kernel, use_mxu=use_mxu, compute_dtype=compute_dtype,
        gelu_approx=not exact_gelu)

    cost = pl.CostEstimate(
        flops=2 * N * HW_pad * C * C + 8 * N * HW_pad * C,
        transcendentals=N * HW_pad * C,
        bytes_accessed=N * C * HW_pad * (in_itemsize + out_itemsize)
        + C * C * w_dtype.itemsize + C * compute_dtype.itemsize,
    )

    compiler_params = pltpu.CompilerParams(
        dimension_semantics=("parallel", "parallel"),
        vmem_limit_bytes=int(vmem_capacity * 0.9),
    )

    x_spec = pl.BlockSpec((1, C, tl), lambda n, t: (n, 0, t))
    out_spec = pl.BlockSpec((1, C, tl), lambda n, t: (n, 0, t))
    out_shape = jax.ShapeDtypeStruct((N, C, HW_pad), out_dtype)

    def _run(single_buffer_consts):
        # Weight/bias never change across the grid -> single-buffer them.
        kwargs = ({"pipeline_mode": pl.Buffered(1)}
                  if single_buffer_consts else {})
        in_specs = [
            x_spec,
            pl.BlockSpec((C, C), lambda n, t: (0, 0), **kwargs),
            pl.BlockSpec((C, 1), lambda n, t: (0, 0), **kwargs),
        ]
        return pl.pallas_call(
            kernel_fn,
            out_shape=out_shape,
            grid_spec=pltpu.PrefetchScalarGridSpec(
                num_scalar_prefetch=0,
                grid=grid,
                in_specs=in_specs,
                out_specs=out_spec,
            ),
            compiler_params=compiler_params,
            cost_estimate=cost,
        )(x3, wt, b2)

    try:
        out3 = _run(True)
    except Exception:
        # pl.Buffered(1) unsupported on this jax version -> default buffering.
        out3 = _run(False)

    if HW_pad != HW:
        out3 = out3[:, :, :HW]
    return out3.reshape(N, C, H, W)


def residual_reference(x_nchw, w, b, *, out_dtype=None, exact_gelu=False):
    """Plain-JAX reference with math matched to the kernel's chosen path."""
    N, C, H, W = x_nchw.shape
    out_dtype = jnp.dtype(out_dtype) if out_dtype is not None else x_nchw.dtype
    compute_dtype = (jnp.dtype(jnp.bfloat16)
                     if out_dtype == jnp.dtype(jnp.bfloat16)
                     else jnp.dtype(jnp.float32))
    x3 = x_nchw.reshape(N, C, H * W).astype(jnp.float32)
    wt = jnp.asarray(w, jnp.float32).T                         # (C_out, C_in)
    if C >= _SMALL_C_MAX:
        h = jnp.einsum("oc,ncl->nol", wt.astype(jnp.bfloat16),
                       x3.astype(jnp.bfloat16),
                       preferred_element_type=jnp.float32)
    else:
        h = jnp.sum(wt[None, :, :, None] * x3[:, None, :, :], axis=2)
    h = h.astype(compute_dtype) + \
        jnp.asarray(b, jnp.float32).reshape(1, C, 1).astype(compute_dtype)
    h = jax.nn.gelu(h, approximate=not exact_gelu)
    out = h + x3.astype(compute_dtype)
    return out.reshape(N, C, H, W).astype(out_dtype)


if __name__ == "__main__":
    key = jax.random.PRNGKey(0)
    kx, kw, kb = jax.random.split(key, 3)

    N, C, H, W = 2, 4, 16, 16
    x = jax.random.normal(kx, (N, C, H, W), dtype=jnp.float32)

    # Deterministic parameter init for the inner fn (truncated-normal-ish).
    w = 0.02 * jax.random.truncated_normal(kw, -2.0, 2.0, (C, C), jnp.float32)
    b = jnp.zeros((C,), dtype=jnp.float32)

    out = jax.block_until_ready(residual_forward(x, w, b))
    ref = residual_reference(x, w, b)

    assert out.shape == x.shape
    err = float(jnp.max(jnp.abs(out.astype(jnp.float32) - ref.astype(jnp.float32))))
    assert jnp.allclose(out, ref, atol=1e-4, rtol=1e-4), err

    print("KERNEL_OK")
</pallas_src>

<mosaic_0001>
module attributes {stable_mosaic.version = 11 : i64} {
  func.func @_residual_kernel(%arg0: i32, %arg1: i32, %arg2: memref<1x4x256xf32, #tpu.memory_space<vmem>>, %arg3: memref<4x4xf32, #tpu.memory_space<vmem>>, %arg4: memref<4x1xf32, #tpu.memory_space<vmem>>, %arg5: memref<1x4x256xf32, #tpu.memory_space<vmem>>) attributes {dimension_semantics = [#tpu.dimension_semantics<parallel>, #tpu.dimension_semantics<parallel>], iteration_bounds = array<i64: 2, 1>, scalar_prefetch = 0 : i64, scratch_operands = 0 : i64, tpu.core_type = #tpu.core_type<tc>, window_params = [{transform_indices = @transform_0, window_bounds = array<i64: 1, 4, 256>}, {pipeline_mode = #tpu.pipeline_mode<synchronous>, transform_indices = @transform_1, window_bounds = array<i64: 4, 4>}, {pipeline_mode = #tpu.pipeline_mode<synchronous>, transform_indices = @transform_2, window_bounds = array<i64: 4, 1>}, {transform_indices = @transform_3, window_bounds = array<i64: 1, 4, 256>}]} {
    %c0 = arith.constant 0 : index
    %c0_0 = arith.constant 0 : index
    %c0_1 = arith.constant 0 : index
    %0 = vector.load %arg2[%c0, %c0_0, %c0_1] : memref<1x4x256xf32, #tpu.memory_space<vmem>>, vector<1x4x256xf32>
    %1 = vector.shape_cast %0 : vector<1x4x256xf32> to vector<4x256xf32>
    %c0_2 = arith.constant 0 : index
    %c0_3 = arith.constant 0 : index
    %2 = vector.load %arg3[%c0_2, %c0_3] : memref<4x4xf32, #tpu.memory_space<vmem>>, vector<4x4xf32>
    %3 = vector.extract_strided_slice %2 {offsets = [0, 0], sizes = [4, 1], strides = [1, 1]} : vector<4x4xf32> to vector<4x1xf32>
    %4 = vector.extract_strided_slice %1 {offsets = [0, 0], sizes = [1, 256], strides = [1, 1]} : vector<4x256xf32> to vector<1x256xf32>
    %5 = vector.broadcast %3 : vector<4x1xf32> to vector<4x256xf32>
    %6 = vector.broadcast %4 : vector<1x256xf32> to vector<4x256xf32>
    %7 = arith.mulf %5, %6 : vector<4x256xf32>
    %8 = vector.extract_strided_slice %2 {offsets = [0, 1], sizes = [4, 1], strides = [1, 1]} : vector<4x4xf32> to vector<4x1xf32>
    %9 = vector.extract_strided_slice %1 {offsets = [1, 0], sizes = [1, 256], strides = [1, 1]} : vector<4x256xf32> to vector<1x256xf32>
    %10 = vector.broadcast %8 : vector<4x1xf32> to vector<4x256xf32>
    %11 = vector.broadcast %9 : vector<1x256xf32> to vector<4x256xf32>
    %12 = arith.mulf %10, %11 : vector<4x256xf32>
    %13 = arith.addf %7, %12 : vector<4x256xf32>
    %14 = vector.extract_strided_slice %2 {offsets = [0, 2], sizes = [4, 1], strides = [1, 1]} : vector<4x4xf32> to vector<4x1xf32>
    %15 = vector.extract_strided_slice %1 {offsets = [2, 0], sizes = [1, 256], strides = [1, 1]} : vector<4x256xf32> to vector<1x256xf32>
    %16 = vector.broadcast %14 : vector<4x1xf32> to vector<4x256xf32>
    %17 = vector.broadcast %15 : vector<1x256xf32> to vector<4x256xf32>
    %18 = arith.mulf %16, %17 : vector<4x256xf32>
    %19 = arith.addf %13, %18 : vector<4x256xf32>
    %20 = vector.extract_strided_slice %2 {offsets = [0, 3], sizes = [4, 1], strides = [1, 1]} : vector<4x4xf32> to vector<4x1xf32>
    %21 = vector.extract_strided_slice %1 {offsets = [3, 0], sizes = [1, 256], strides = [1, 1]} : vector<4x256xf32> to vector<1x256xf32>
    %22 = vector.broadcast %20 : vector<4x1xf32> to vector<4x256xf32>
    %23 = vector.broadcast %21 : vector<1x256xf32> to vector<4x256xf32>
    %24 = arith.mulf %22, %23 : vector<4x256xf32>
    %25 = arith.addf %19, %24 : vector<4x256xf32>
    %c0_4 = arith.constant 0 : index
    %c0_5 = arith.constant 0 : index
    %26 = vector.load %arg4[%c0_4, %c0_5] : memref<4x1xf32, #tpu.memory_space<vmem>>, vector<4x1xf32>
    %27 = vector.broadcast %26 : vector<4x1xf32> to vector<4x256xf32>
    %28 = arith.addf %25, %27 : vector<4x256xf32>
    %29 = arith.mulf %28, %28 : vector<4x256xf32>
    %30 = arith.mulf %28, %29 : vector<4x256xf32>
    %cst = arith.constant 4.471500e-02 : f32
    %31 = vector.broadcast %cst : f32 to vector<4x256xf32>
    %32 = arith.mulf %31, %30 : vector<4x256xf32>
    %33 = arith.addf %28, %32 : vector<4x256xf32>
    %cst_6 = arith.constant 0.797884583 : f32
    %34 = vector.broadcast %cst_6 : f32 to vector<4x256xf32>
    %35 = arith.mulf %34, %33 : vector<4x256xf32>
    %36 = math.tanh %35 : vector<4x256xf32>
    %cst_7 = arith.constant 1.000000e+00 : f32
    %37 = vector.broadcast %cst_7 : f32 to vector<4x256xf32>
    %38 = arith.addf %37, %36 : vector<4x256xf32>
    %cst_8 = arith.constant 5.000000e-01 : f32
    %39 = vector.broadcast %cst_8 : f32 to vector<4x256xf32>
    %40 = arith.mulf %39, %38 : vector<4x256xf32>
    %41 = arith.mulf %28, %40 : vector<4x256xf32>
    %42 = arith.addf %41, %1 : vector<4x256xf32>
    %c0_9 = arith.constant 0 : index
    %c0_10 = arith.constant 0 : index
    %c0_11 = arith.constant 0 : index
    %43 = vector.load %arg5[%c0_9, %c0_10, %c0_11] : memref<1x4x256xf32, #tpu.memory_space<vmem>>, vector<1x4x256xf32>
    %44 = vector.shape_cast %43 : vector<1x4x256xf32> to vector<4x256xf32>
    %45 = vector.shape_cast %42 : vector<4x256xf32> to vector<1x4x256xf32>
    tpu.vector_store %arg5[%c0_9, %c0_10, %c0_11], %45 {strides = array<i32>} : memref<1x4x256xf32, #tpu.memory_space<vmem>>, vector<1x4x256xf32>,
    return
  }
  func.func @transform_0(%arg0: i32, %arg1: i32) -> (i32, i32, i32) {
    %c0_i32 = arith.constant 0 : i32
    %c0_i32_0 = arith.constant 0 : i32
    return %arg0, %c0_i32, %arg1 : i32, i32, i32
  }
  func.func @transform_1(%arg0: i32, %arg1: i32) -> (i32, i32) {
    %c0_i32 = arith.constant 0 : i32
    %c0_i32_0 = arith.constant 0 : i32
    %c0_i32_1 = arith.constant 0 : i32
    return %c0_i32, %c0_i32_0 : i32, i32
  }
  func.func @transform_2(%arg0: i32, %arg1: i32) -> (i32, i32) {
    %c0_i32 = arith.constant 0 : i32
    %c0_i32_0 = arith.constant 0 : i32
    %c0_i32_1 = arith.constant 0 : i32
    return %c0_i32, %c0_i32_0 : i32, i32
  }
  func.func @transform_3(%arg0: i32, %arg1: i32) -> (i32, i32, i32) {
    %c0_i32 = arith.constant 0 : i32
    %c0_i32_0 = arith.constant 0 : i32
    return %arg0, %c0_i32, %arg1 : i32, i32, i32
  }
}

module attributes {stable_mosaic.version = 11 : i64} {
  func.func @_residual_kernel(%arg0: i32, %arg1: i32, %arg2: memref<1x4x256xf32, #tpu.memory_space<vmem>>, %arg3: memref<4x4xf32, #tpu.memory_space<vmem>>, %arg4: memref<4x1xf32, #tpu.memory_space<vmem>>, %arg5: memref<1x4x256xf32, #tpu.memory_space<vmem>>) attributes {dimension_semantics = [#tpu.dimension_semantics<parallel>, #tpu.dimension_semantics<parallel>], iteration_bounds = array<i64: 2, 1>, scalar_prefetch = 0 : i64, scratch_operands = 0 : i64, tpu.core_type = #tpu.core_type<tc>, window_params = [{transform_indices = @transform_0, window_bounds = array<i64: 1, 4, 256>}, {pipeline_mode = #tpu.pipeline_mode<synchronous>, transform_indices = @transform_1, window_bounds = array<i64: 4, 4>}, {pipeline_mode = #tpu.pipeline_mode<synchronous>, transform_indices = @transform_2, window_bounds = array<i64: 4, 1>}, {transform_indices = @transform_3, window_bounds = array<i64: 1, 4, 256>}]} {
    %c0 = arith.constant 0 : index
    %c0_0 = arith.constant 0 : index
    %c0_1 = arith.constant 0 : index
    %0 = vector.load %arg2[%c0, %c0_0, %c0_1] : memref<1x4x256xf32, #tpu.memory_space<vmem>>, vector<1x4x256xf32>
    %1 = vector.shape_cast %0 : vector<1x4x256xf32> to vector<4x256xf32>
    %c0_2 = arith.constant 0 : index
    %c0_3 = arith.constant 0 : index
    %2 = vector.load %arg3[%c0_2, %c0_3] : memref<4x4xf32, #tpu.memory_space<vmem>>, vector<4x4xf32>
    %3 = vector.extract_strided_slice %2 {offsets = [0, 0], sizes = [4, 1], strides = [1, 1]} : vector<4x4xf32> to vector<4x1xf32>
    %4 = vector.extract_strided_slice %1 {offsets = [0, 0], sizes = [1, 256], strides = [1, 1]} : vector<4x256xf32> to vector<1x256xf32>
    %5 = vector.broadcast %3 : vector<4x1xf32> to vector<4x256xf32>
    %6 = vector.broadcast %4 : vector<1x256xf32> to vector<4x256xf32>
    %7 = arith.mulf %5, %6 : vector<4x256xf32>
    %8 = vector.extract_strided_slice %2 {offsets = [0, 1], sizes = [4, 1], strides = [1, 1]} : vector<4x4xf32> to vector<4x1xf32>
    %9 = vector.extract_strided_slice %1 {offsets = [1, 0], sizes = [1, 256], strides = [1, 1]} : vector<4x256xf32> to vector<1x256xf32>
    %10 = vector.broadcast %8 : vector<4x1xf32> to vector<4x256xf32>
    %11 = vector.broadcast %9 : vector<1x256xf32> to vector<4x256xf32>
    %12 = arith.mulf %10, %11 : vector<4x256xf32>
    %13 = arith.addf %7, %12 : vector<4x256xf32>
    %14 = vector.extract_strided_slice %2 {offsets = [0, 2], sizes = [4, 1], strides = [1, 1]} : vector<4x4xf32> to vector<4x1xf32>
    %15 = vector.extract_strided_slice %1 {offsets = [2, 0], sizes = [1, 256], strides = [1, 1]} : vector<4x256xf32> to vector<1x256xf32>
    %16 = vector.broadcast %14 : vector<4x1xf32> to vector<4x256xf32>
    %17 = vector.broadcast %15 : vector<1x256xf32> to vector<4x256xf32>
    %18 = arith.mulf %16, %17 : vector<4x256xf32>
    %19 = arith.addf %13, %18 : vector<4x256xf32>
    %20 = vector.extract_strided_slice %2 {offsets = [0, 3], sizes = [4, 1], strides = [1, 1]} : vector<4x4xf32> to vector<4x1xf32>
    %21 = vector.extract_strided_slice %1 {offsets = [3, 0], sizes = [1, 256], strides = [1, 1]} : vector<4x256xf32> to vector<1x256xf32>
    %22 = vector.broadcast %20 : vector<4x1xf32> to vector<4x256xf32>
    %23 = vector.broadcast %21 : vector<1x256xf32> to vector<4x256xf32>
    %24 = arith.mulf %22, %23 : vector<4x256xf32>
    %25 = arith.addf %19, %24 : vector<4x256xf32>
    %c0_4 = arith.constant 0 : index
    %c0_5 = arith.constant 0 : index
    %26 = vector.load %arg4[%c0_4, %c0_5] : memref<4x1xf32, #tpu.memory_space<vmem>>, vector<4x1xf32>
    %27 = vector.broadcast %26 : vector<4x1xf32> to vector<4x256xf32>
    %28 = arith.addf %25, %27 : vector<4x256xf32>
    %29 = arith.mulf %28, %28 : vector<4x256xf32>
    %30 = arith.mulf %28, %29 : vector<4x256xf32>
    %cst = arith.constant 4.471500e-02 : f32
    %31 = vector.broadcast %cst : f32 to vector<4x256xf32>
    %32 = arith.mulf %31, %30 : vector<4x256xf32>
    %33 = arith.addf %28, %32 : vector<4x256xf32>
    %cst_6 = arith.constant 0.797884583 : f32
    %34 = vector.broadcast %cst_6 : f32 to vector<4x256xf32>
    %35 = arith.mulf %34, %33 : vector<4x256xf32>
    %36 = math.tanh %35 : vector<4x256xf32>
    %cst_7 = arith.constant 1.000000e+00 : f32
    %37 = vector.broadcast %cst_7 : f32 to vector<4x256xf32>
    %38 = arith.addf %37, %36 : vector<4x256xf32>
    %cst_8 = arith.constant 5.000000e-01 : f32
    %39 = vector.broadcast %cst_8 : f32 to vector<4x256xf32>
    %40 = arith.mulf %39, %38 : vector<4x256xf32>
    %41 = arith.mulf %28, %40 : vector<4x256xf32>
    %42 = arith.addf %41, %1 : vector<4x256xf32>
    %c0_9 = arith.constant 0 : index
    %c0_10 = arith.constant 0 : index
    %c0_11 = arith.constant 0 : index
    %43 = vector.load %arg5[%c0_9, %c0_10, %c0_11] : memref<1x4x256xf32, #tpu.memory_space<vmem>>, vector<1x4x256xf32>
    %44 = vector.shape_cast %43 : vector<1x4x256xf32> to vector<4x256xf32>
    %45 = vector.shape_cast %42 : vector<4x256xf32> to vector<1x4x256xf32>
    tpu.vector_store %arg5[%c0_9, %c0_10, %c0_11], %45 {strides = array<i32>} : memref<1x4x256xf32, #tpu.memory_space<vmem>>, vector<1x4x256xf32>,
    return
  }
  func.func @transform_0(%arg0: i32, %arg1: i32) -> (i32, i32, i32) {
    %c0_i32 = arith.constant 0 : i32
    %c0_i32_0 = arith.constant 0 : i32
    return %arg0, %c0_i32, %arg1 : i32, i32, i32
  }
  func.func @transform_1(%arg0: i32, %arg1: i32) -> (i32, i32) {
    %c0_i32 = arith.constant 0 : i32
    %c0_i32_0 = arith.constant 0 : i32
    %c0_i32_1 = arith.constant 0 : i32
    return %c0_i32, %c0_i32_0 : i32, i32
  }
  func.func @transform_2(%arg0: i32, %arg1: i32) -> (i32, i32) {
    %c0_i32 = arith.constant 0 : i32
    %c0_i32_0 = arith.constant 0 : i32
    %c0_i32_1 = arith.constant 0 : i32
    return %c0_i32, %c0_i32_0 : i32, i32
  }
  func.func @transform_3(%arg0: i32, %arg1: i32) -> (i32, i32, i32) {
    %c0_i32 = arith.constant 0 : i32
    %c0_i32_0 = arith.constant 0 : i32
    return %arg0, %c0_i32, %arg1 : i32, i32, i32
  }
}

</mosaic_0001>

<bundles_post_ra>
// kernel: tpu_custom_call.1
= control target key start
LH: loop header
LB: loop body
LE: loop exit
PB: predicated region body
PF: predicated region fallthrough
CT: control target
= control target key end

     0   :  { %8 = vsyncpa [#allocation3], 0  ;;  %s836_s0 = inlined_call_operand.hbm [shape: f32[2,4,256], index: 0, kind: input, shape index: {}]   ;;  %s837_s1 = inlined_call_operand.vmem [shape: f32[4,4], index: 1, kind: input, shape index: {}]   ;;  %s838_s2 = inlined_call_operand.vmem [shape: f32[4,1], index: 2, kind: input, shape index: {}]   ;;  %s839_s3 = inlined_call_operand.hbm [shape: f32[2,4,256], index: 3, kind: output, shape index: {}]  }
   0x1   :  { %10 = vsyncpa [#allocation3 + $0x1], 0 }
   0x2   :  { %11 = vsyncpa [#allocation4], 0 }
   0x3   :  { %13 = vsyncpa [#allocation4 + $0x1], 0  ;;  %s679_s12 = smov 0   ;;  %s681_s13 = smov 0  }
   0x4   :  { %s683_s14 = smov 0   ;;  %s685_s15 = smov 0  }
   0x5   :  { %s687_s16 = smov 0   ;;  %s689_s17 = smov 0  }
   0x6 LB: > { %s449_s18 = sadd.s32 4294967295, %s651_s17   ;;  %s450_s19 = sadd.s32 4294967294, %s651_s17   ;;  %s651_s17 = sphi %s689_s17, %s19_s17   ;;  %s647_s16 = sphi %s687_s16, %s851_s16   ;;  %s643_s15 = sphi %s685_s15, %s850_s15   ;;  %s639_s14 = sphi %s683_s14, %s849_s14   ;;  %s635_s13 = sphi %s681_s13, %s848_s13   ;;  %s631_s12 = sphi %s679_s12, %s847_s12  }
   0x7   : > { %s31_s20 = sadd.s32 1, %s647_s16  ;;  %s40_s21 = sadd.s32 1, %s639_s14 }
   0x8   : > { %p33_p0 = scmp.ge.s32.totalorder %s31_s20, 2  ;;  %p47_p1 = scmp.ne.s32.totalorder %s639_s14, %s635_s13 }
   0x9   : > { %p48_p2 = scmp.eq.s32.totalorder %s651_s17, 0  ;;  %p53_p3 = scmp.ne.s32.totalorder %s635_s13, %s631_s12 }
   0xa   : > { %s853_s20 = smov (%p33_p0, %s31_s20), 0  ;;  %p54_p5 = scmp.eq.s32.totalorder %s449_s18, 0 }
   0xb   : > { %p720_p4 = por %p48_p2, %p47_p1  ;;  %s35_s23 = ssub.s32 %s647_s16, %s853_s20 }
   0xc   : > { %p121_p6 = scmp.eq.s32.totalorder %s449_s18, 1  ;;  %p38_p7 = scmp.eq.s32.totalorder %s35_s23, 0 }
   0xd   : > { %p726_p8 = por %p54_p5, %p53_p3  ;;  %p127_p10 = scmp.eq.s32.totalorder %s450_s19, 1 }
   0xe   : > { %p730_p9 = por %p121_p6, %p47_p1  ;;  %p478_p13 = scmp.lt.s32.totalorder %s651_s17, 2 }
   0xf   : > { %s735_s26 = scalar_select %p38_p7, %s639_s14, %s40_s21  }
  0x10   : > { %p737_p11 = por %p127_p10, %p53_p3  ;;  %s153_s28 = sand.u32 1, %s639_s14  }
  0x11   : > { %s453_s29 = sshll.u32 %s153_s28, 3  ;;  %s464_s30 = sshll.u32 %s647_s16, 7 }
  0x12   : > { %s843_s27 = scalar_select %p737_p11, 1, 0 }
  0x13   : > { %s165_s6 = scalar_lea.hbm %s836_s0, %s464_s30  ;;  %s157_s7 = scalar_lea.vmem [#allocation2], %s453_s29 }
  0x14   : > { %s167_s8 = sshll.u32 %s157_s7, 4  ;;  %p750_p0 = pnand %p478_p13, %p720_p4  ;;  %s168_s8 = int_to_ptr.vmem [resolvable:$true] %s167_s8 }
  0x15   : > { %p456_p1 = scmp.ge.s32.totalorder %s651_s17, 1  ;;  %p172_p2 = scmp.lt.s32.totalorder %s651_s17, 3 }
  0x16   : > { %s154_s10 = scalar_lea.sflag [#allocation3], %s153_s28  ;;  %p545_p3 = pneg %p750_p0 }
  0x17   : > { %s556_s11 = scalar_lea.vmem %s168_s8, 128  ;;  %s653_s18 = smov [#allocation2]  }
  0x18   : > { %p557_p5 = scmp.ne.s32.totalorder %s168_s8, %s556_s11  ;;  %s561_s19 = sshll.u32 %s653_s18, 4  ;;  %s562_s19 = int_to_ptr.vmem [resolvable:$false] %s561_s19 }
  0x19   : > { %s563_s21 = scalar_lea.vmem %s562_s19, 256  ;;  %p564_p10 = scmp.lt.s32.totalorder %s168_s8, %s562_s19 }
  0x1a   : > { %p559_p6 = pnand %p557_p5, %p545_p3  ;;  %p565_p12 = scmp.lt.s32.totalorder %s563_s21, %s556_s11 }
  0x1c   : > { %p560_p7 = pneg %p559_p6  ;;  %p566_p4 = por %p565_p12, %p564_p10 }
  0x1e   : > { %p567_p13 = pnand %p566_p4, %p560_p7 }
  0x20   : > { %570 = shalt.err (!%p567_p13)
}
  0x21   : > { %473 = dma.hbm_to_vmem [thread:$0]  (!%p750_p0), %s165_s6, 128, %s168_s8, %s154_s10  }
  0x22   : > { %p173_p11 = pnand %p456_p1, %p172_p2 }
  0x23   : > { %s765_s22 = sand.u32 (!%p173_p11), 1, %s635_s13  }
  0x24   : > { %176 = sbr.rel (%p173_p11) target bundleno = 231 (0xe7), region = 32  ;;  %s457_s23 = sshll.u32 (!%p173_p11), %s765_s22, 3 }
  0x25   : > { %s179_s28 = scalar_lea.sflag (!%p173_p11), [#allocation3], %s765_s22  ;;  %s182_s29 = scalar_lea.vmem (!%p173_p11), [#allocation2], %s457_s23 }
  0x29   : > { %622 = dma.done.wait (%p726_p8), %s179_s28, 128  }
  0x2a   : > { %624 = vsyncadd (%p726_p8), %s179_s28, 4294967168  ;;  %v654_v0 = vmov 0   ;;  %v655_v1 = vmov 2   ;;  %v208_v2 = vld [vmem:[%s837_s1] sm:$0xf]  ;;  %v656_v3 = vmov 1   ;;  %v215_v6 = vlaneseq }
  0x2b   : > { %532 = vset.pattern.permute.xlu0 %v654_v0  ;;  %534 = vset.pattern.permute.xlu1 %v655_v1  ;;  %v657_v4 = vmov 3   ;;  %v313_v5 = vld [vmem:[%s838_s2] sm:$0xf]  ;;  %s465_s24 = sshll.u32 %s643_s15, 7  ;;  %s204_s7 = scalar_lea.vmem [#allocation5], %s457_s23 }
  0x2c   : > { %211 = vperm.xlu0 %532, %v208_v2   ;;  %262 = vperm.xlu1 %534, %v208_v2   ;;  %v216_v7 = vshrl.u32 %v215_v6, 7  ;;  %v781_v12 = vld [vmem:[%s182_s29] sm:$0xff]  ;;  %s365_s8 = sshll.u32 %s204_s7, 4  ;;  %s363_s11 = scalar_lea.hbm %s839_s3, %s465_s24  ;;  %s366_s8 = int_to_ptr.vmem [resolvable:$true] %s365_s8 }
  0x2d   : > { %v339_v6 = vcombine.high %v781_v12, %v781_v12  ;;  %s349_s18 = scalar_lea.sflag [#allocation4], %s765_s22  ;;  %s571_s19 = scalar_lea.vmem %s366_s8, 128 }
  0x2e   : > { %v217_v8 = vsub.s32 0, %v216_v7  ;;  %v221_v9 = vsub.s32 4, %v216_v7  ;;  %v241_v10 = vsub.s32 1, %v216_v7  ;;  %v245_v11 = vsub.s32 5, %v216_v7  ;;  %p572_p8 = scmp.ne.s32.totalorder %s366_s8, %s571_s19  ;;  %s658_s21 = smov [#allocation5]  }
  0x2f   : > { %v267_v13 = vsub.s32 2, %v216_v7  ;;  %v271_v14 = vsub.s32 6, %v216_v7  ;;  %v293_v15 = vsub.s32 3, %v216_v7  ;;  %v297_v16 = vsub.s32 7, %v216_v7  ;;  %s575_s28 = sshll.u32 %s658_s21, 4  ;;  %s576_s28 = int_to_ptr.vmem [resolvable:$false] %s575_s28 }
  0x30   : > { %533 = vset.pattern.permute.xlu0 %v656_v3  ;;  %535 = vset.pattern.permute.xlu1 %v657_v4  ;;  %v218_v17 = vrot.slane %v781_v12, %v217_v8  ;;  %v222_v18 = vrot.slane %v781_v12, %v221_v9  ;;  %v242_v19 = vrot.slane %v781_v12, %v241_v10  ;;  %p573_p11 = pnand %p572_p8, %p730_p9  ;;  %s577_s15 = scalar_lea.vmem %s576_s28, 256 }
  0x31   : > { %236 = vperm.xlu0 %533, %v208_v2   ;;  %288 = vperm.xlu1 %535, %v208_v2   ;;  %v246_v20 = vrot.slane %v781_v12, %v245_v11  ;;  %v268_v21 = vrot.slane %v781_v12, %v267_v13  ;;  %v272_v22 = vrot.slane %v781_v12, %v271_v14  ;;  %p578_p0 = scmp.lt.s32.totalorder %s366_s8, %s576_s28  ;;  %p579_p1 = scmp.lt.s32.totalorder %s577_s15, %s571_s19 }
  0x32   : > { %v294_v25 = vrot.slane %v781_v12, %v293_v15  ;;  %v298_v26 = vrot.slane %v781_v12, %v297_v16  ;;  %v228_v27 = vrot.slane %v218_v17, %v217_v8  ;;  %v232_v28 = vrot.slane %v222_v18, %v217_v8  ;;  %p574_p12 = pneg %p573_p11 }
  0x33   : > { %v252_v29 = vrot.slane %v242_v19, %v241_v10  ;;  %v256_v30 = vrot.slane %v246_v20, %v241_v10  ;;  %v278_v31 = vrot.slane %v268_v21, %v267_v13  ;;  %v282_v32 = vrot.slane %v272_v22, %v267_v13  ;;  %p580_p2 = por %p579_p1, %p578_p0 }
  0x34   : > { %v304_v33 = vrot.slane %v294_v25, %v293_v15  ;;  %v308_v34 = vrot.slane %v298_v26, %v293_v15 }
  0x35   : > { %536 = vset.pattern.permute.xlu1 %v654_v0  ;;  %537 = vset.pattern.permute.xlu0 %v654_v0  ;;  %p581_p3 = pnand %p580_p2, %p574_p12 }
  0x36   : > { %316 = vperm.xlu1 %536, %v313_v5  }
  0xa7   : > { %v212_v23 = vpop.permute.xlu0 %211  ;;  %v263_v24 = vpop.permute.xlu1 %262 }
  0xa8   : > { %v233_v37 = vmul.f32 %v228_v27, %v212_v23  ;;  %v234_v38 = vmul.f32 %v232_v28, %v212_v23  ;;  %v283_v41 = vmul.f32 %v278_v31, %v263_v24  ;;  %v284_v42 = vmul.f32 %v282_v32, %v263_v24 }
  0xac   : > { %v237_v35 = vpop.permute.xlu0 %236  ;;  %v289_v36 = vpop.permute.xlu1 %288 }
  0xad   : > { %v257_v39 = vmul.f32 %v252_v29, %v237_v35  ;;  %v258_v40 = vmul.f32 %v256_v30, %v237_v35  ;;  %v309_v45 = vmul.f32 %v304_v33, %v289_v36  ;;  %v310_v46 = vmul.f32 %v308_v34, %v289_v36 }
  0xaf   : > { %v259_v43 = vadd.f32 %v257_v39, %v233_v37  ;;  %v260_v44 = vadd.f32 %v258_v40, %v234_v38 }
  0xb1   : > { %v285_v47 = vadd.f32 %v283_v41, %v259_v43  ;;  %v286_v48 = vadd.f32 %v284_v42, %v260_v44  ;;  %v317_v49 = vpop.permute.xlu1 %316 }
  0xb3   : > { %v311_v50 = vadd.f32 %v309_v45, %v285_v47  ;;  %v312_v51 = vadd.f32 %v310_v46, %v286_v48 }
  0xb5   : > { %v319_v52 = vadd.f32 %v317_v49, %v311_v50  ;;  %v320_v53 = vadd.f32 %v317_v49, %v312_v51 }
  0xb7   : > { %v321_v54 = vmul.f32 %v319_v52, %v319_v52  ;;  %v322_v55 = vmul.f32 %v320_v53, %v320_v53 }
  0xb9   : > { %v323_v56 = vmul.f32 %v321_v54, %v319_v52  ;;  %v324_v57 = vmul.f32 %v322_v55, %v320_v53 }
  0xbb   : > { %v325_v58 = vmul.f32 0.044715, %v323_v56  ;;  %v326_v59 = vmul.f32 0.044715, %v324_v57 }
  0xbd   : > { %v327_v60 = vadd.f32 %v325_v58, %v319_v52  ;;  %v328_v61 = vadd.f32 %v326_v59, %v320_v53 }
  0xbf   : > { %v329_v62 = vmul.f32 0.7978846, %v327_v60  ;;  %v330_v63 = vmul.f32 0.7978846, %v328_v61 }
  0xc1   : > { %539 = vtanh.f32 %v329_v62 }
  0xc2   : > { %541 = vtanh.f32 %v330_v63 }
  0xce   : > { %v540_v0 = vpop.eup %539 }
  0xcf   : > { %v542_v1 = vpop.eup %541  ;;  %v333_v2 = vadd.f32 1.0, %v540_v0 }
  0xd0   : > { %v334_v3 = vadd.f32 1.0, %v542_v1 }
  0xd1   : > { %v335_v4 = vmul.f32 0.5, %v333_v2 }
  0xd2   : > { %v336_v5 = vmul.f32 0.5, %v334_v3 }
  0xd3   : > { %v337_v7 = vmul.f32 %v335_v4, %v319_v52 }
  0xd4   : > { %v338_v8 = vmul.f32 %v336_v5, %v320_v53 }
  0xd5   : > { %v341_v9 = vadd.f32 %v337_v7, %v781_v12 }
  0xd6   : > { %v342_v10 = vadd.f32 %v339_v6, %v338_v8 }
  0xd8   : > { %v345_v11 = vcombine.low %v341_v9, %v342_v10 }
  0xda   : > { %347 = vst [vmem:[%s204_s7] sm:$0xff] %v345_v11 }
  0xdb   : > { %584 = shalt.err (!%p581_p3)
}
  0xdc   : > { %s585_s23 = scalar_lea.hbm %s363_s11, 128  ;;  %s589_s30 = scalar_lea.hbm %s839_s3, 256 }
  0xdd   : > { %p586_p5 = scmp.ne.s32.totalorder %s363_s11, %s585_s23  ;;  %p590_p10 = scmp.lt.s32.totalorder %s363_s11, %s839_s3 }
  0xde   : > { %p591_p4 = scmp.lt.s32.totalorder %s589_s30, %s585_s23 }
  0xdf   : > { %p587_p6 = pnand %p586_p5, %p730_p9 }
  0xe0   : > { %p592_p13 = por %p591_p4, %p590_p10 }
  0xe1   : > { %p588_p7 = pneg %p587_p6 }
  0xe3   : > { %p593_p8 = pnand %p592_p13, %p588_p7 }
  0xe5   : > { %596 = shalt.err (!%p593_p8)
}
  0xe6   : > { %468 = dma.vmem_to_hbm [thread:$0]  (%p730_p9), %s366_s8, 128, %s363_s11, %s349_s18  }
  0xe7 PF: > { %s377_s6 = sand.u32 1, %s631_s12   ;;  %p845_p11 = scmp.ne.s32.totalorder %s843_s27, 0 }
  0xe8   : > { %p846_p12 = scmp.ge.s32.totalorder %s651_s17, 2  ;;  %s378_s24 = scalar_lea.sflag [#allocation4], %s377_s6 }
  0xea   : > { %p475_p0 = pnand %p846_p12, %p845_p11 }
  0xec   : > { %p476_p1 = pneg %p475_p0 }
  0xee   : > { %626 = dma.done.wait (%p476_p1), %s378_s24, 128  }
  0xef   : > { %628 = vsyncadd (%p476_p1), %s378_s24, 4294967168  ;;  %s19_s17 = sadd.s32 1, %s651_s17   ;;  %s847_s12 = smov %s635_s13 }
  0xf0   : > { %p16_p2 = scmp.ge.s32.totalorder %s19_s17, 4   ;;  %s848_s13 = smov %s639_s14 }
  0xf1   : > { %s849_s14 = smov %s735_s26  ;;  %s850_s15 = smov %s647_s16 }
  0xf2   : > { %s851_s16 = smov %s853_s20  ;;  %18 = sbr.rel (!%p16_p2) target bundleno = 6 (0x6), region = 77 }
  0xf7   :  { %383 = vsyncpa [#allocation3], 1 }
  0xf8   :  { %385 = vsyncpa [#allocation3 + $0x1], 1 }
  0xf9   :  { %386 = vsyncpa [#allocation4], 1 }
  0xfa   :  { %388 = vsyncpa [#allocation4 + $0x1], 1 }

// kernel: tpu_custom_call.1
= control target key start
LH: loop header
LB: loop body
LE: loop exit
PB: predicated region body
PF: predicated region fallthrough
CT: control target
= control target key end

     0   :  { %8 = vsyncpa [#allocation3], 0  ;;  %s836_s0 = inlined_call_operand.hbm [shape: f32[2,4,256], index: 0, kind: input, shape index: {}]   ;;  %s837_s1 = inlined_call_operand.vmem [shape: f32[4,4], index: 1, kind: input, shape index: {}]   ;;  %s838_s2 = inlined_call_operand.vmem [shape: f32[4,1], index: 2, kind: input, shape index: {}]   ;;  %s839_s3 = inlined_call_operand.hbm [shape: f32[2,4,256], index: 3, kind: output, shape index: {}]  }
   0x1   :  { %10 = vsyncpa [#allocation3 + $0x1], 0 }
   0x2   :  { %11 = vsyncpa [#allocation4], 0 }
   0x3   :  { %13 = vsyncpa [#allocation4 + $0x1], 0  ;;  %s679_s12 = smov 0   ;;  %s681_s13 = smov 0  }
   0x4   :  { %s683_s14 = smov 0   ;;  %s685_s15 = smov 0  }
   0x5   :  { %s687_s16 = smov 0   ;;  %s689_s17 = smov 0  }
   0x6 LB: > { %s449_s18 = sadd.s32 4294967295, %s651_s17   ;;  %s450_s19 = sadd.s32 4294967294, %s651_s17   ;;  %s651_s17 = sphi %s689_s17, %s19_s17   ;;  %s647_s16 = sphi %s687_s16, %s851_s16   ;;  %s643_s15 = sphi %s685_s15, %s850_s15   ;;  %s639_s14 = sphi %s683_s14, %s849_s14   ;;  %s635_s13 = sphi %s681_s13, %s848_s13   ;;  %s631_s12 = sphi %s679_s12, %s847_s12  }
   0x7   : > { %s31_s20 = sadd.s32 1, %s647_s16  ;;  %s40_s21 = sadd.s32 1, %s639_s14 }
   0x8   : > { %p33_p0 = scmp.ge.s32.totalorder %s31_s20, 2  ;;  %p47_p1 = scmp.ne.s32.totalorder %s639_s14, %s635_s13 }
   0x9   : > { %p48_p2 = scmp.eq.s32.totalorder %s651_s17, 0  ;;  %p53_p3 = scmp.ne.s32.totalorder %s635_s13, %s631_s12 }
   0xa   : > { %s853_s20 = smov (%p33_p0, %s31_s20), 0  ;;  %p54_p5 = scmp.eq.s32.totalorder %s449_s18, 0 }
   0xb   : > { %p720_p4 = por %p48_p2, %p47_p1  ;;  %s35_s23 = ssub.s32 %s647_s16, %s853_s20 }
   0xc   : > { %p121_p6 = scmp.eq.s32.totalorder %s449_s18, 1  ;;  %p38_p7 = scmp.eq.s32.totalorder %s35_s23, 0 }
   0xd   : > { %p726_p8 = por %p54_p5, %p53_p3  ;;  %p127_p10 = scmp.eq.s32.totalorder %s450_s19, 1 }
   0xe   : > { %p730_p9 = por %p121_p6, %p47_p1  ;;  %p478_p13 = scmp.lt.s32.totalorder %s651_s17, 2 }
   0xf   : > { %s735_s26 = scalar_select %p38_p7, %s639_s14, %s40_s21  }
  0x10   : > { %p737_p11 = por %p127_p10, %p53_p3  ;;  %s153_s28 = sand.u32 1, %s639_s14  }
  0x11   : > { %s453_s29 = sshll.u32 %s153_s28, 3  ;;  %s464_s30 = sshll.u32 %s647_s16, 7 }
  0x12   : > { %s843_s27 = scalar_select %p737_p11, 1, 0 }
  0x13   : > { %s165_s6 = scalar_lea.hbm %s836_s0, %s464_s30  ;;  %s157_s7 = scalar_lea.vmem [#allocation2], %s453_s29 }
  0x14   : > { %s167_s8 = sshll.u32 %s157_s7, 4  ;;  %p750_p0 = pnand %p478_p13, %p720_p4  ;;  %s168_s8 = int_to_ptr.vmem [resolvable:$true] %s167_s8 }
  0x15   : > { %p456_p1 = scmp.ge.s32.totalorder %s651_s17, 1  ;;  %p172_p2 = scmp.lt.s32.totalorder %s651_s17, 3 }
  0x16   : > { %s154_s10 = scalar_lea.sflag [#allocation3], %s153_s28  ;;  %p545_p3 = pneg %p750_p0 }
  0x17   : > { %s556_s11 = scalar_lea.vmem %s168_s8, 128  ;;  %s653_s18 = smov [#allocation2]  }
  0x18   : > { %p557_p5 = scmp.ne.s32.totalorder %s168_s8, %s556_s11  ;;  %s561_s19 = sshll.u32 %s653_s18, 4  ;;  %s562_s19 = int_to_ptr.vmem [resolvable:$false] %s561_s19 }
  0x19   : > { %s563_s21 = scalar_lea.vmem %s562_s19, 256  ;;  %p564_p10 = scmp.lt.s32.totalorder %s168_s8, %s562_s19 }
  0x1a   : > { %p559_p6 = pnand %p557_p5, %p545_p3  ;;  %p565_p12 = scmp.lt.s32.totalorder %s563_s21, %s556_s11 }
  0x1c   : > { %p560_p7 = pneg %p559_p6  ;;  %p566_p4 = por %p565_p12, %p564_p10 }
  0x1e   : > { %p567_p13 = pnand %p566_p4, %p560_p7 }
  0x20   : > { %570 = shalt.err (!%p567_p13)
}
  0x21   : > { %473 = dma.hbm_to_vmem [thread:$0]  (!%p750_p0), %s165_s6, 128, %s168_s8, %s154_s10  }
  0x22   : > { %p173_p11 = pnand %p456_p1, %p172_p2 }
  0x23   : > { %s765_s22 = sand.u32 (!%p173_p11), 1, %s635_s13  }
  0x24   : > { %176 = sbr.rel (%p173_p11) target bundleno = 231 (0xe7), region = 32  ;;  %s457_s23 = sshll.u32 (!%p173_p11), %s765_s22, 3 }
  0x25   : > { %s179_s28 = scalar_lea.sflag (!%p173_p11), [#allocation3], %s765_s22  ;;  %s182_s29 = scalar_lea.vmem (!%p173_p11), [#allocation2], %s457_s23 }
  0x29   : > { %622 = dma.done.wait (%p726_p8), %s179_s28, 128  }
  0x2a   : > { %624 = vsyncadd (%p726_p8), %s179_s28, 4294967168  ;;  %v654_v0 = vmov 0   ;;  %v655_v1 = vmov 2   ;;  %v208_v2 = vld [vmem:[%s837_s1] sm:$0xf]  ;;  %v656_v3 = vmov 1   ;;  %v215_v6 = vlaneseq }
  0x2b   : > { %532 = vset.pattern.permute.xlu0 %v654_v0  ;;  %534 = vset.pattern.permute.xlu1 %v655_v1  ;;  %v657_v4 = vmov 3   ;;  %v313_v5 = vld [vmem:[%s838_s2] sm:$0xf]  ;;  %s465_s24 = sshll.u32 %s643_s15, 7  ;;  %s204_s7 = scalar_lea.vmem [#allocation5], %s457_s23 }
  0x2c   : > { %211 = vperm.xlu0 %532, %v208_v2   ;;  %262 = vperm.xlu1 %534, %v208_v2   ;;  %v216_v7 = vshrl.u32 %v215_v6, 7  ;;  %v781_v12 = vld [vmem:[%s182_s29] sm:$0xff]  ;;  %s365_s8 = sshll.u32 %s204_s7, 4  ;;  %s363_s11 = scalar_lea.hbm %s839_s3, %s465_s24  ;;  %s366_s8 = int_to_ptr.vmem [resolvable:$true] %s365_s8 }
  0x2d   : > { %v339_v6 = vcombine.high %v781_v12, %v781_v12  ;;  %s349_s18 = scalar_lea.sflag [#allocation4], %s765_s22  ;;  %s571_s19 = scalar_lea.vmem %s366_s8, 128 }
  0x2e   : > { %v217_v8 = vsub.s32 0, %v216_v7  ;;  %v221_v9 = vsub.s32 4, %v216_v7  ;;  %v241_v10 = vsub.s32 1, %v216_v7  ;;  %v245_v11 = vsub.s32 5, %v216_v7  ;;  %p572_p8 = scmp.ne.s32.totalorder %s366_s8, %s571_s19  ;;  %s658_s21 = smov [#allocation5]  }
  0x2f   : > { %v267_v13 = vsub.s32 2, %v216_v7  ;;  %v271_v14 = vsub.s32 6, %v216_v7  ;;  %v293_v15 = vsub.s32 3, %v216_v7  ;;  %v297_v16 = vsub.s32 7, %v216_v7  ;;  %s575_s28 = sshll.u32 %s658_s21, 4  ;;  %s576_s28 = int_to_ptr.vmem [resolvable:$false] %s575_s28 }
  0x30   : > { %533 = vset.pattern.permute.xlu0 %v656_v3  ;;  %535 = vset.pattern.permute.xlu1 %v657_v4  ;;  %v218_v17 = vrot.slane %v781_v12, %v217_v8  ;;  %v222_v18 = vrot.slane %v781_v12, %v221_v9  ;;  %v242_v19 = vrot.slane %v781_v12, %v241_v10  ;;  %p573_p11 = pnand %p572_p8, %p730_p9  ;;  %s577_s15 = scalar_lea.vmem %s576_s28, 256 }
  0x31   : > { %236 = vperm.xlu0 %533, %v208_v2   ;;  %288 = vperm.xlu1 %535, %v208_v2   ;;  %v246_v20 = vrot.slane %v781_v12, %v245_v11  ;;  %v268_v21 = vrot.slane %v781_v12, %v267_v13  ;;  %v272_v22 = vrot.slane %v781_v12, %v271_v14  ;;  %p578_p0 = scmp.lt.s32.totalorder %s366_s8, %s576_s28  ;;  %p579_p1 = scmp.lt.s32.totalorder %s577_s15, %s571_s19 }
  0x32   : > { %v294_v25 = vrot.slane %v781_v12, %v293_v15  ;;  %v298_v26 = vrot.slane %v781_v12, %v297_v16  ;;  %v228_v27 = vrot.slane %v218_v17, %v217_v8  ;;  %v232_v28 = vrot.slane %v222_v18, %v217_v8  ;;  %p574_p12 = pneg %p573_p11 }
  0x33   : > { %v252_v29 = vrot.slane %v242_v19, %v241_v10  ;;  %v256_v30 = vrot.slane %v246_v20, %v241_v10  ;;  %v278_v31 = vrot.slane %v268_v21, %v267_v13  ;;  %v282_v32 = vrot.slane %v272_v22, %v267_v13  ;;  %p580_p2 = por %p579_p1, %p578_p0 }
  0x34   : > { %v304_v33 = vrot.slane %v294_v25, %v293_v15  ;;  %v308_v34 = vrot.slane %v298_v26, %v293_v15 }
  0x35   : > { %536 = vset.pattern.permute.xlu1 %v654_v0  ;;  %537 = vset.pattern.permute.xlu0 %v654_v0  ;;  %p581_p3 = pnand %p580_p2, %p574_p12 }
  0x36   : > { %316 = vperm.xlu1 %536, %v313_v5  }
  0xa7   : > { %v212_v23 = vpop.permute.xlu0 %211  ;;  %v263_v24 = vpop.permute.xlu1 %262 }
  0xa8   : > { %v233_v37 = vmul.f32 %v228_v27, %v212_v23  ;;  %v234_v38 = vmul.f32 %v232_v28, %v212_v23  ;;  %v283_v41 = vmul.f32 %v278_v31, %v263_v24  ;;  %v284_v42 = vmul.f32 %v282_v32, %v263_v24 }
  0xac   : > { %v237_v35 = vpop.permute.xlu0 %236  ;;  %v289_v36 = vpop.permute.xlu1 %288 }
  0xad   : > { %v257_v39 = vmul.f32 %v252_v29, %v237_v35  ;;  %v258_v40 = vmul.f32 %v256_v30, %v237_v35  ;;  %v309_v45 = vmul.f32 %v304_v33, %v289_v36  ;;  %v310_v46 = vmul.f32 %v308_v34, %v289_v36 }
  0xaf   : > { %v259_v43 = vadd.f32 %v257_v39, %v233_v37  ;;  %v260_v44 = vadd.f32 %v258_v40, %v234_v38 }
  0xb1   : > { %v285_v47 = vadd.f32 %v283_v41, %v259_v43  ;;  %v286_v48 = vadd.f32 %v284_v42, %v260_v44  ;;  %v317_v49 = vpop.permute.xlu1 %316 }
  0xb3   : > { %v311_v50 = vadd.f32 %v309_v45, %v285_v47  ;;  %v312_v51 = vadd.f32 %v310_v46, %v286_v48 }
  0xb5   : > { %v319_v52 = vadd.f32 %v317_v49, %v311_v50  ;;  %v320_v53 = vadd.f32 %v317_v49, %v312_v51 }
  0xb7   : > { %v321_v54 = vmul.f32 %v319_v52, %v319_v52  ;;  %v322_v55 = vmul.f32 %v320_v53, %v320_v53 }
  0xb9   : > { %v323_v56 = vmul.f32 %v321_v54, %v319_v52  ;;  %v324_v57 = vmul.f32 %v322_v55, %v320_v53 }
  0xbb   : > { %v325_v58 = vmul.f32 0.044715, %v323_v56  ;;  %v326_v59 = vmul.f32 0.044715, %v324_v57 }
  0xbd   : > { %v327_v60 = vadd.f32 %v325_v58, %v319_v52  ;;  %v328_v61 = vadd.f32 %v326_v59, %v320_v53 }
  0xbf   : > { %v329_v62 = vmul.f32 0.7978846, %v327_v60  ;;  %v330_v63 = vmul.f32 0.7978846, %v328_v61 }
  0xc1   : > { %539 = vtanh.f32 %v329_v62 }
  0xc2   : > { %541 = vtanh.f32 %v330_v63 }
  0xce   : > { %v540_v0 = vpop.eup %539 }
  0xcf   : > { %v542_v1 = vpop.eup %541  ;;  %v333_v2 = vadd.f32 1.0, %v540_v0 }
  0xd0   : > { %v334_v3 = vadd.f32 1.0, %v542_v1 }
  0xd1   : > { %v335_v4 = vmul.f32 0.5, %v333_v2 }
  0xd2   : > { %v336_v5 = vmul.f32 0.5, %v334_v3 }
  0xd3   : > { %v337_v7 = vmul.f32 %v335_v4, %v319_v52 }
  0xd4   : > { %v338_v8 = vmul.f32 %v336_v5, %v320_v53 }
  0xd5   : > { %v341_v9 = vadd.f32 %v337_v7, %v781_v12 }
  0xd6   : > { %v342_v10 = vadd.f32 %v339_v6, %v338_v8 }
  0xd8   : > { %v345_v11 = vcombine.low %v341_v9, %v342_v10 }
  0xda   : > { %347 = vst [vmem:[%s204_s7] sm:$0xff] %v345_v11 }
  0xdb   : > { %584 = shalt.err (!%p581_p3)
}
  0xdc   : > { %s585_s23 = scalar_lea.hbm %s363_s11, 128  ;;  %s589_s30 = scalar_lea.hbm %s839_s3, 256 }
  0xdd   : > { %p586_p5 = scmp.ne.s32.totalorder %s363_s11, %s585_s23  ;;  %p590_p10 = scmp.lt.s32.totalorder %s363_s11, %s839_s3 }
  0xde   : > { %p591_p4 = scmp.lt.s32.totalorder %s589_s30, %s585_s23 }
  0xdf   : > { %p587_p6 = pnand %p586_p5, %p730_p9 }
  0xe0   : > { %p592_p13 = por %p591_p4, %p590_p10 }
  0xe1   : > { %p588_p7 = pneg %p587_p6 }
  0xe3   : > { %p593_p8 = pnand %p592_p13, %p588_p7 }
  0xe5   : > { %596 = shalt.err (!%p593_p8)
}
  0xe6   : > { %468 = dma.vmem_to_hbm [thread:$0]  (%p730_p9), %s366_s8, 128, %s363_s11, %s349_s18  }
  0xe7 PF: > { %s377_s6 = sand.u32 1, %s631_s12   ;;  %p845_p11 = scmp.ne.s32.totalorder %s843_s27, 0 }
  0xe8   : > { %p846_p12 = scmp.ge.s32.totalorder %s651_s17, 2  ;;  %s378_s24 = scalar_lea.sflag [#allocation4], %s377_s6 }
  0xea   : > { %p475_p0 = pnand %p846_p12, %p845_p11 }
  0xec   : > { %p476_p1 = pneg %p475_p0 }
  0xee   : > { %626 = dma.done.wait (%p476_p1), %s378_s24, 128  }
  0xef   : > { %628 = vsyncadd (%p476_p1), %s378_s24, 4294967168  ;;  %s19_s17 = sadd.s32 1, %s651_s17   ;;  %s847_s12 = smov %s635_s13 }
  0xf0   : > { %p16_p2 = scmp.ge.s32.totalorder %s19_s17, 4   ;;  %s848_s13 = smov %s639_s14 }
  0xf1   : > { %s849_s14 = smov %s735_s26  ;;  %s850_s15 = smov %s647_s16 }
  0xf2   : > { %s851_s16 = smov %s853_s20  ;;  %18 = sbr.rel (!%p16_p2) target bundleno = 6 (0x6), region = 77 }
  0xf7   :  { %383 = vsyncpa [#allocation3], 1 }
  0xf8   :  { %385 = vsyncpa [#allocation3 + $0x1], 1 }
  0xf9   :  { %386 = vsyncpa [#allocation4], 1 }
  0xfa   :  { %388 = vsyncpa [#allocation4 + $0x1], 1 }

</bundles_post_ra>
